<compile_context>
chip_gen: v6e
topology: v6e:2x2x1
jax: 0.10.0
libtpu: 0.0.40
codegen_flags: <defaults>
</compile_context>

<pallas_src>
import functools

import jax
import jax.numpy as jnp
from jax.experimental import pallas as pl
from jax.experimental.pallas import tpu as pltpu


def _round_up(x, mult):
    return ((x + mult - 1) // mult) * mult


def _exp_score_tile(ref_ref, srct_ref):
    """exp(min(2 * ref @ srcT - 2, 0)) for one (tm, tn) tile, f32."""
    xy = jax.lax.dot_general(
        ref_ref[...],                       # (tm, d)
        srct_ref[...],                      # (d, tn)  -- pre-transposed in XLA
        dimension_numbers=(((1,), (0,)), ((), ())),
        preferred_element_type=jnp.float32,
    )                                       # (tm, tn) f32 accumulator
    return jnp.exp(jnp.minimum(2.0 * xy - 2.0, 0.0))


def _sums_kernel(ref_ref, srct_ref, colmask_ref, rowsum_ref, colpart_ref, *,
                 n, tm, last_i, pad_rows):
    """Pass 1: row sums (resident accumulator over j) + column-sum partials."""
    i = pl.program_id(0)
    j = pl.program_id(1)

    # Padded src columns (zero features) would contribute exp(-2); mask them.
    s = _exp_score_tile(ref_ref, srct_ref) * colmask_ref[...]

    # Row sums: output block index is (i, 0) -> resident across the inner
    # ("arbitrary") column axis; classic init/accumulate pattern.
    @pl.when(j == 0)
    def _():
        rowsum_ref[...] = jnp.zeros_like(rowsum_ref)

    rowsum_ref[...] += jnp.sum(s, axis=1, keepdims=True)

    # Column-sum partials: one tiny (8, tn) block per grid step (unmasked
    # broadcast store), reduced by a trivial XLA sum outside.
    def _write_colpart(tile):
        cs = jnp.sum(tile, axis=0, keepdims=True)            # (1, tn)
        colpart_ref[...] = jnp.broadcast_to(cs, colpart_ref.shape)

    if pad_rows:
        # Padded ref rows (zero features) exist only in the last row tile;
        # exclude them from the column sums, and only there.
        @pl.when(i == last_i)
        def _():
            rows = jax.lax.broadcasted_iota(jnp.int32, s.shape, 0) + i * tm
            _write_colpart(jnp.where(rows < n, s, 0.0))

        @pl.when(i != last_i)
        def _():
            _write_colpart(s)
    else:
        _write_colpart(s)


def _dual_scores_kernel(ref_ref, srct_ref, invrow_ref, invcol_ref, out_ref):
    """Pass 2: recompute exp-score tile, apply dual normalization (no masks)."""
    s = _exp_score_tile(ref_ref, srct_ref)
    # (s/rs)*(s/cs) == s*s * (1/rs) * (1/cs); reciprocals precomputed in XLA.
    out_ref[...] = (s * s) * invrow_ref[...] * invcol_ref[...]


def _plain_scores_kernel(ref_ref, srct_ref, out_ref):
    out_ref[...] = _exp_score_tile(ref_ref, srct_ref)


def compute_matching_scores(ref_feats, src_feats, dual_normalization=True, *,
                            tile_m=256, tile_n=1024, compute_dtype=None):
    """Dense (n, m) matching-score matrix (dual-normalized if requested)."""
    n, d = ref_feats.shape
    m, d2 = src_feats.shape
    assert d == d2

    if compute_dtype is not None:
        ref_feats = ref_feats.astype(compute_dtype)
        src_feats = src_feats.astype(compute_dtype)

    # --- Row tiling (sublane aligned); aim for >= 2 row tiles so both v7x
    # TensorCores get work on the leading "parallel" axis.
    n8 = _round_up(n, 8)
    tm = min(tile_m, n8)
    if n8 > 8 and _round_up(n, tm) // tm < 2:
        tm = _round_up((n + 1) // 2, 8)
    n_pad = _round_up(n, tm)
    num_i = n_pad // tm

    # --- Column tiling (lane aligned); bounds VMEM independent of m.
    tn = min(tile_n, _round_up(m, 128))
    m_pad = _round_up(m, tn)
    num_j = m_pad // tn

    ref_p = jnp.pad(ref_feats, ((0, n_pad - n), (0, 0)))            # (n_pad, d)
    # Pre-transpose src once in XLA so the MXU sees a lane-dense (K, N) RHS.
    src_t = jnp.pad(src_feats.T, ((0, 0), (0, m_pad - m)))          # (d, m_pad)

    elem = ref_p.dtype.itemsize
    # One grid step's block footprint (x2 for double buffering, + headroom).
    blk_bytes = (tm * d * elem + d * tn * elem          # ref + srcT blocks
                 + tm * tn * 4                          # score/output tile (f32)
                 + 8 * tn * 4 + tm * 4 + 2 * tn * 4)    # partials / vectors
    vmem_limit = int(min(56 * 1024 * 1024, max(32 * 1024 * 1024, 4 * blk_bytes)))

    flops = 2 * n_pad * m_pad * d
    transcendentals = n_pad * m_pad

    if dual_normalization:
        col_mask = (jnp.arange(m_pad, dtype=jnp.int32) < m
                    ).astype(jnp.float32).reshape(1, m_pad)

        # ---- Pass 1: row sums + column-sum partials.
        row_sum, col_part = pl.pallas_call(
            functools.partial(_sums_kernel, n=n, tm=tm, last_i=num_i - 1,
                              pad_rows=n_pad > n),
            out_shape=(
                jax.ShapeDtypeStruct((n_pad, 1), jnp.float32),
                jax.ShapeDtypeStruct((num_i * 8, m_pad), jnp.float32),
            ),
            grid=(num_i, num_j),
            in_specs=[
                pl.BlockSpec((tm, d), lambda i, j: (i, 0)),
                pl.BlockSpec((d, tn), lambda i, j: (0, j)),
                pl.BlockSpec((1, tn), lambda i, j: (0, j)),
            ],
            out_specs=(
                pl.BlockSpec((tm, 1), lambda i, j: (i, 0)),
                pl.BlockSpec((8, tn), lambda i, j: (i, j)),
            ),
            compiler_params=pltpu.CompilerParams(
                dimension_semantics=("parallel", "arbitrary"),
                vmem_limit_bytes=vmem_limit,
            ),
            cost_estimate=pl.CostEstimate(
                flops=flops,
                transcendentals=transcendentals,
                bytes_accessed=(n_pad * d + m_pad * d) * elem
                + (n_pad + num_i * 8 * m_pad + m_pad) * 4,
            ),
        )(ref_p, src_t, col_mask)

        col_sum = col_part.reshape(num_i, 8, m_pad)[:, 0, :].sum(
            axis=0, keepdims=True)                                  # (1, m_pad)
        # Reciprocals in XLA (tiny); padded rows/cols -> 0 so no inf/nan.
        inv_row = jnp.where(row_sum > 0.0, 1.0 / row_sum, 0.0)      # (n_pad, 1)
        inv_col = jnp.where(col_sum > 0.0, 1.0 / col_sum, 0.0)      # (1, m_pad)

        # ---- Pass 2: recompute exp-score tiles and normalize (pure elementwise).
        scores = pl.pallas_call(
            _dual_scores_kernel,
            out_shape=jax.ShapeDtypeStruct((n_pad, m_pad), jnp.float32),
            grid=(num_i, num_j),
            in_specs=[
                pl.BlockSpec((tm, d), lambda i, j: (i, 0)),
                pl.BlockSpec((d, tn), lambda i, j: (0, j)),
                pl.BlockSpec((tm, 1), lambda i, j: (i, 0)),
                pl.BlockSpec((1, tn), lambda i, j: (0, j)),
            ],
            out_specs=pl.BlockSpec((tm, tn), lambda i, j: (i, j)),
            compiler_params=pltpu.CompilerParams(
                dimension_semantics=("parallel", "parallel"),
                vmem_limit_bytes=vmem_limit,
            ),
            cost_estimate=pl.CostEstimate(
                flops=flops,
                transcendentals=transcendentals,
                bytes_accessed=(num_i * m_pad * d + n_pad * d) * elem
                + n_pad * m_pad * 4 + (n_pad + m_pad) * 4,
            ),
        )(ref_p, src_t, inv_row, inv_col)
    else:
        scores = pl.pallas_call(
            _plain_scores_kernel,
            out_shape=jax.ShapeDtypeStruct((n_pad, m_pad), jnp.float32),
            grid=(num_i, num_j),
            in_specs=[
                pl.BlockSpec((tm, d), lambda i, j: (i, 0)),
                pl.BlockSpec((d, tn), lambda i, j: (0, j)),
            ],
            out_specs=pl.BlockSpec((tm, tn), lambda i, j: (i, j)),
            compiler_params=pltpu.CompilerParams(
                dimension_semantics=("parallel", "parallel"),
                vmem_limit_bytes=vmem_limit,
            ),
            cost_estimate=pl.CostEstimate(
                flops=flops,
                transcendentals=transcendentals,
                bytes_accessed=(num_i * m_pad * d + n_pad * d) * elem
                + n_pad * m_pad * 4,
            ),
        )(ref_p, src_t)

    return scores[:n, :m]


def superpoint_matching(ref_feats, src_feats, num_correspondences,
                        dual_normalization=True, compute_dtype=jnp.bfloat16):
    """JAX/Pallas equivalent of SuperPointMatching_equ.forward with masks=None.

    Returns (ref_corr_indices, src_corr_indices, corr_scores).
    """
    # TODO(synk): only the masks=None (all-True) path is implemented; torch.nonzero
    # on arbitrary boolean masks yields data-dependent shapes.
    n = ref_feats.shape[0]
    m = src_feats.shape[0]

    scores = compute_matching_scores(
        ref_feats, src_feats, dual_normalization, compute_dtype=compute_dtype
    )

    # TODO(synk): a fused in-kernel partial top-k would avoid materializing the
    # dense f32 score matrix; jax.lax.top_k on the dense matrix is used here.
    k = min(num_correspondences, n * m)
    corr_scores, corr_idx = jax.lax.top_k(scores.reshape(-1), k)
    ref_corr_indices = (corr_idx // m).astype(jnp.int32)
    src_corr_indices = (corr_idx % m).astype(jnp.int32)
    return ref_corr_indices, src_corr_indices, corr_scores


if __name__ == "__main__":
    key = jax.random.PRNGKey(0)
    k_ref, k_src = jax.random.split(key)

    N_REF, N_SRC, D = 16, 24, 32
    NUM_CORRESPONDENCES = 8

    ref_feats = jax.random.normal(k_ref, (N_REF, D), dtype=jnp.float32)
    src_feats = jax.random.normal(k_src, (N_SRC, D), dtype=jnp.float32)
    # pairwise_distance(..., normalized=True) assumes L2-normalized features.
    ref_feats = ref_feats / jnp.linalg.norm(ref_feats, axis=-1, keepdims=True)
    src_feats = src_feats / jnp.linalg.norm(src_feats, axis=-1, keepdims=True)

    # ---- f32 operand path: tight check against a plain-JAX reference.
    dense_f32 = compute_matching_scores(ref_feats, src_feats, True,
                                        compute_dtype=None)
    xy = ref_feats @ src_feats.T
    s32 = jnp.exp(-jnp.maximum(2.0 - 2.0 * xy, 0.0))
    s32 = (s32 / s32.sum(axis=1, keepdims=True)) * (s32 / s32.sum(axis=0, keepdims=True))
    assert dense_f32.shape == (N_REF, N_SRC)
    assert jnp.allclose(dense_f32, s32, rtol=1e-4, atol=1e-7)

    # ---- Default (bf16 operand) end-to-end path.
    ref_corr_idx, src_corr_idx, corr_scores = superpoint_matching(
        ref_feats, src_feats, NUM_CORRESPONDENCES, dual_normalization=True
    )
    jax.block_until_ready((ref_corr_idx, src_corr_idx, corr_scores))

    # Reference with the same operand precision (bf16 operands, f32 accumulate).
    rb = ref_feats.astype(jnp.bfloat16)
    sb = src_feats.astype(jnp.bfloat16)
    xyb = jax.lax.dot_general(rb, sb, dimension_numbers=(((1,), (1,)), ((), ())),
                              preferred_element_type=jnp.float32)
    sb16 = jnp.exp(-jnp.maximum(2.0 - 2.0 * xyb, 0.0))
    sb16 = (sb16 / sb16.sum(axis=1, keepdims=True)) * (sb16 / sb16.sum(axis=0, keepdims=True))

    exp_scores, _ = jax.lax.top_k(sb16.reshape(-1), NUM_CORRESPONDENCES)
    assert jnp.allclose(corr_scores, exp_scores, rtol=1e-3, atol=1e-6)
    # The returned index pairs must point at the top scores in the reference matrix.
    assert jnp.allclose(sb16[ref_corr_idx, src_corr_idx], corr_scores,
                        rtol=1e-3, atol=1e-6)

    print("KERNEL_OK")
</pallas_src>

<mosaic_0001>
module attributes {stable_mosaic.version = 11 : i64} {
  func.func @_sums_kernel(%arg0: i32, %arg1: i32, %arg2: memref<8x32xf32, #tpu.memory_space<vmem>>, %arg3: memref<32x128xf32, #tpu.memory_space<vmem>>, %arg4: memref<1x128xf32, #tpu.memory_space<vmem>>, %arg5: memref<8x1xf32, #tpu.memory_space<vmem>>, %arg6: memref<8x128xf32, #tpu.memory_space<vmem>>) attributes {dimension_semantics = [#tpu.dimension_semantics<parallel>, #tpu.dimension_semantics<arbitrary>], iteration_bounds = array<i64: 2, 1>, scalar_prefetch = 0 : i64, scratch_operands = 0 : i64, tpu.core_type = #tpu.core_type<tc>, window_params = [{transform_indices = @transform_0, window_bounds = array<i64: 8, 32>}, {transform_indices = @transform_1, window_bounds = array<i64: 32, 128>}, {transform_indices = @transform_2, window_bounds = array<i64: 1, 128>}, {transform_indices = @transform_3, window_bounds = array<i64: 8, 1>}, {transform_indices = @transform_4, window_bounds = array<i64: 8, 128>}]} {
    %c0 = arith.constant 0 : index
    %c0_0 = arith.constant 0 : index
    %0 = vector.load %arg2[%c0, %c0_0] : memref<8x32xf32, #tpu.memory_space<vmem>>, vector<8x32xf32>
    %c0_1 = arith.constant 0 : index
    %c0_2 = arith.constant 0 : index
    %1 = vector.load %arg3[%c0_1, %c0_2] : memref<32x128xf32, #tpu.memory_space<vmem>>, vector<32x128xf32>
    %cst = arith.constant dense<0.000000e+00> : vector<8x128xf32>
    %2 = tpu.matmul %0, %1, %cst {dimension_numbers = #tpu.dot_dimension_numbers<[1], [0], [0], [1], [0, 0, 1, 1], [], []>} : vector<8x32xf32>, vector<32x128xf32>, vector<8x128xf32> -> vector<8x128xf32>
    %cst_3 = arith.constant 2.000000e+00 : f32
    %3 = vector.broadcast %cst_3 : f32 to vector<8x128xf32>
    %4 = arith.mulf %3, %2 : vector<8x128xf32>
    %cst_4 = arith.constant 2.000000e+00 : f32
    %5 = vector.broadcast %cst_4 : f32 to vector<8x128xf32>
    %6 = arith.subf %4, %5 : vector<8x128xf32>
    %cst_5 = arith.constant 0.000000e+00 : f32
    %7 = vector.broadcast %cst_5 : f32 to vector<8x128xf32>
    %8 = arith.minimumf %6, %7 : vector<8x128xf32>
    %9 = math.exp %8 : vector<8x128xf32>
    %c0_6 = arith.constant 0 : index
    %c0_7 = arith.constant 0 : index
    %10 = vector.load %arg4[%c0_6, %c0_7] : memref<1x128xf32, #tpu.memory_space<vmem>>, vector<1x128xf32>
    %11 = vector.broadcast %10 : vector<1x128xf32> to vector<8x128xf32>
    %12 = arith.mulf %9, %11 : vector<8x128xf32>
    %c0_i32 = arith.constant 0 : i32
    %13 = arith.cmpi eq, %arg1, %c0_i32 : i32
    %14 = arith.extui %13 : i1 to i32
    %c0_i32_8 = arith.constant 0 : i32
    %15 = arith.cmpi ne, %14, %c0_i32_8 : i32
    scf.if %15 {
      %cst_17 = arith.constant 0.000000e+00 : f32
      %26 = vector.broadcast %cst_17 : f32 to vector<8x1xf32>
      %c0_18 = arith.constant 0 : index
      %c0_19 = arith.constant 0 : index
      %27 = vector.load %arg5[%c0_18, %c0_19] : memref<8x1xf32, #tpu.memory_space<vmem>>, vector<8x1xf32>
      tpu.vector_store %arg5[%c0_18, %c0_19], %26 {strides = array<i32>} : memref<8x1xf32, #tpu.memory_space<vmem>>, vector<8x1xf32>,
    } else {
    }
    %c0_9 = arith.constant 0 : index
    %c0_10 = arith.constant 0 : index
    %16 = vector.load %arg5[%c0_9, %c0_10] : memref<8x1xf32, #tpu.memory_space<vmem>>, vector<8x1xf32>
    %cst_11 = arith.constant dense<0.000000e+00> : vector<8xf32>
    %17 = vector.multi_reduction <add>, %12, %cst_11 [1] : vector<8x128xf32> to vector<8xf32>
    %18 = vector.shape_cast %17 : vector<8xf32> to vector<8x1xf32>
    %19 = arith.addf %16, %18 : vector<8x1xf32>
    %c0_12 = arith.constant 0 : index
    %c0_13 = arith.constant 0 : index
    %20 = vector.load %arg5[%c0_12, %c0_13] : memref<8x1xf32, #tpu.memory_space<vmem>>, vector<8x1xf32>
    tpu.vector_store %arg5[%c0_12, %c0_13], %19 {strides = array<i32>} : memref<8x1xf32, #tpu.memory_space<vmem>>, vector<8x1xf32>,
    %cst_14 = arith.constant dense<0.000000e+00> : vector<128xf32>
    %21 = vector.multi_reduction <add>, %12, %cst_14 [0] : vector<8x128xf32> to vector<128xf32>
    %22 = vector.shape_cast %21 : vector<128xf32> to vector<1x128xf32>
    %23 = vector.shape_cast %22 : vector<1x128xf32> to vector<1x128xf32>
    %24 = vector.broadcast %23 : vector<1x128xf32> to vector<8x128xf32>
    %c0_15 = arith.constant 0 : index
    %c0_16 = arith.constant 0 : index
    %25 = vector.load %arg6[%c0_15, %c0_16] : memref<8x128xf32, #tpu.memory_space<vmem>>, vector<8x128xf32>
    tpu.vector_store %arg6[%c0_15, %c0_16], %24 {strides = array<i32>} : memref<8x128xf32, #tpu.memory_space<vmem>>, vector<8x128xf32>,
    return
  }
  func.func @transform_0(%arg0: i32, %arg1: i32) -> (i32, i32) {
    %c0_i32 = arith.constant 0 : i32
    %c0_i32_0 = arith.constant 0 : i32
    return %arg0, %c0_i32 : i32, i32
  }
  func.func @transform_1(%arg0: i32, %arg1: i32) -> (i32, i32) {
    %c0_i32 = arith.constant 0 : i32
    %c0_i32_0 = arith.constant 0 : i32
    return %c0_i32, %arg1 : i32, i32
  }
  func.func @transform_2(%arg0: i32, %arg1: i32) -> (i32, i32) {
    %c0_i32 = arith.constant 0 : i32
    %c0_i32_0 = arith.constant 0 : i32
    return %c0_i32, %arg1 : i32, i32
  }
  func.func @transform_3(%arg0: i32, %arg1: i32) -> (i32, i32) {
    %c0_i32 = arith.constant 0 : i32
    %c0_i32_0 = arith.constant 0 : i32
    return %arg0, %c0_i32 : i32, i32
  }
  func.func @transform_4(%arg0: i32, %arg1: i32) -> (i32, i32) {
    %c0_i32 = arith.constant 0 : i32
    return %arg0, %arg1 : i32, i32
  }
}

</mosaic_0001>

<bundles_post_ra>
// kernel: tpu_custom_call.1
= control target key start
LH: loop header
LB: loop body
LE: loop exit
PB: predicated region body
PF: predicated region fallthrough
CT: control target
= control target key end

     0   :  { %s1007_s0 = inlined_call_operand.hbm [shape: f32[16,32], index: 0, kind: input, shape index: {}]   ;;  %s1008_s1 = inlined_call_operand.hbm [shape: f32[32,128], index: 1, kind: input, shape index: {}]   ;;  %s1009_s2 = inlined_call_operand.vmem [shape: f32[1,128], index: 2, kind: input, shape index: {}]   ;;  %s1010_s3 = inlined_call_operand.vmem [shape: f32[16,1], index: 3, kind: output, shape index: {0}]   ;;  %s1011_s4 = inlined_call_operand.hbm [shape: f32[16,128], index: 4, kind: output, shape index: {1}]  }
   0x1   :  { %1013 = sst [smem:[#allocation11_spill]] %s1008_s1 }
   0x2   :  { %10 = vsyncpa [#allocation3], 0 }
   0x3   :  { %12 = vsyncpa [#allocation3 + $0x1], 0 }
   0x4   :  { %13 = vsyncpa [#allocation6], 0 }
   0x5   :  { %14 = vsyncpa [#allocation4], 0 }
   0x6   :  { %16 = vsyncpa [#allocation4 + $0x1], 0  ;;  %s821_s15 = smov 0   ;;  %s823_s16 = smov 0  }
   0x7   :  { %s825_s17 = smov 0   ;;  %s827_s18 = smov 0  }
   0x8   :  { %s829_s19 = smov 0   ;;  %s831_s20 = smov 0  }
   0x9 LB: > { %s534_s21 = sadd.s32 4294967295, %s787_s20   ;;  %s535_s22 = sadd.s32 4294967294, %s787_s20   ;;  %s787_s20 = sphi %s831_s20, %s22_s20   ;;  %s783_s19 = sphi %s829_s19, %s1031_s19   ;;  %s779_s18 = sphi %s827_s18, %s1030_s18   ;;  %s775_s17 = sphi %s825_s17, %s1029_s17   ;;  %s771_s16 = sphi %s823_s16, %s1028_s16   ;;  %s767_s15 = sphi %s821_s15, %s1027_s15  }
   0xa   : > { %p54_p0 = scmp.ne.s32.totalorder %s771_s16, %s767_s15  ;;  %p855_p1 = scmp.eq.s32.totalorder %s534_s21, 0 }
   0xb   : > { %p859_p2 = scmp.eq.s32.totalorder %s534_s21, 1  ;;  %p164_p3 = scmp.eq.s32.totalorder %s535_s22, 1 }
   0xc   : > { %p865_p4 = por %p855_p1, %p54_p0  ;;  %p536_p5 = scmp.ge.s32.totalorder %s787_s20, 1 }
   0xd   : > { %p870_p6 = por %p164_p3, %p54_p0  ;;  %p171_p7 = scmp.lt.s32.totalorder %s787_s20, 3 }
   0xe   : > { %s1016_s25 = scalar_select %p865_p4, 1, 0 }
   0xf   : > { %s1017_s26 = scalar_select %p870_p6, 1, 0 }
  0x10   : > { %p875_p8 = pnand %p536_p5, %p171_p7  ;;  %s789_s28 = smov [#allocation5]  }
  0x11   : > { %s185_s29 = sshll.u32 %s789_s28, 4  ;;  %s34_s5 = sadd.s32 1, %s783_s19  ;;  %s186_s29 = int_to_ptr.vmem [resolvable:$true] %s185_s29 }
  0x12   : > { %p578_p9 = pneg %p875_p8  ;;  %s660_s6 = scalar_lea.vmem %s186_s29, 512 }
  0x13   : > { %p661_p13 = scmp.ne.s32.totalorder %s186_s29, %s660_s6  ;;  %p668_p5 = scmp.lt.s32.totalorder %s186_s29, %s186_s29 }
  0x14   : > { %p884_p11 = pnand %p578_p9, %p855_p1  ;;  %p669_p7 = scmp.lt.s32.totalorder %s660_s6, %s660_s6 }
  0x16   : > { %p651_p12 = pneg %p884_p11  ;;  %p670_p6 = por %p669_p7, %p668_p5 }
  0x18   : > { %p663_p0 = pnand %p661_p13, %p651_p12 }
  0x1a   : > { %p664_p3 = pneg %p663_p0 }
  0x1c   : > { %p671_p4 = pnand %p670_p6, %p664_p3 }
  0x1e   : > { %674 = shalt.err (!%p671_p4)
}
  0x1f   : > { %s790_s7 = smov 128   ;;  %s791_s8 = smov 8  }
  0x20   : > { %s1020_s1 = sld [smem:[#allocation11_spill]]  ;;  %p36_p6 = scmp.ge.s32.totalorder %s34_s5, 2 }
  0x21   : > { %s41_s11 = sadd.s32 1, %s775_s17  ;;  %p48_p4 = scmp.ne.s32.totalorder %s775_s17, %s771_s16 }
  0x22   : > { %p49_p9 = scmp.eq.s32.totalorder %s787_s20, 0  ;;  %s1033_s5 = smov (%p36_p6, %s34_s5), 0 }
  0x23   : > { %p908_p13 = por %p859_p2, %p48_p4  ;;  %s38_s14 = ssub.s32 %s783_s19, %s1033_s5 }
  0x24   : > { %p902_p12 = por %p49_p9, %p48_p4  ;;  %p591_p0 = scmp.lt.s32.totalorder %s787_s20, 2 }
  0x25   : > { %s205_s21 = sand.u32 1, %s775_s17  }
  0x26   : > { %581 = dma.hbm_to_vmem [thread:$0]  (!%p884_p11), %s1020_s1, 512, %s186_s29, [#allocation6], %s790_s7, %s790_s7, %s791_s8  }
  0x27   : > { %p39_p11 = scmp.eq.s32.totalorder %s38_s14, 0  ;;  %s540_s22 = sshll.u32 %s205_s21, 3 }
  0x28   : > { %s541_s29 = sshll.u32 %s783_s19, 7  ;;  %s209_s8 = scalar_lea.vmem [#allocation2], %s540_s22 }
  0x29   : > { %s917_s28 = scalar_select %p39_p11, %s775_s17, %s41_s11  }
  0x2a   : > { %s214_s7 = scalar_lea.hbm %s1007_s0, %s541_s29  ;;  %s216_s9 = sshll.u32 %s209_s8, 4  ;;  %s217_s9 = int_to_ptr.vmem [resolvable:$true] %s216_s9 }
  0x2b   : > { %p925_p2 = pnand %p591_p0, %p902_p12  ;;  %s206_s10 = scalar_lea.sflag [#allocation3], %s205_s21 }
  0x2c   : > { %s688_s14 = scalar_lea.vmem %s217_s9, 128  ;;  %s792_s11 = smov [#allocation2]  }
  0x2d   : > { %p677_p3 = pneg %p925_p2  ;;  %p689_p5 = scmp.ne.s32.totalorder %s217_s9, %s688_s14 }
  0x2e   : > { %s693_s1 = sshll.u32 %s792_s11, 4  ;;  %s694_s1 = int_to_ptr.vmem [resolvable:$false] %s693_s1 }
  0x2f   : > { %p691_p7 = pnand %p689_p5, %p677_p3  ;;  %s695_s29 = scalar_lea.vmem %s694_s1, 256 }
  0x30   : > { %p696_p4 = scmp.lt.s32.totalorder %s217_s9, %s694_s1  ;;  %p697_p9 = scmp.lt.s32.totalorder %s695_s29, %s688_s14 }
  0x31   : > { %p692_p6 = pneg %p691_p7 }
  0x32   : > { %p698_p11 = por %p697_p9, %p696_p4 }
  0x34   : > { %p699_p10 = pnand %p698_p11, %p692_p6 }
  0x36   : > { %702 = shalt.err (!%p699_p10)
}
  0x37   : > { %585 = dma.hbm_to_vmem [thread:$0]  (!%p925_p2), %s214_s7, 128, %s217_s9, %s206_s10  }
  0x38   : > { %225 = sbr.rel (%p875_p8) target bundleno = 431 (0x1af), region = 32  ;;  %s936_s12 = sand.u32 (!%p875_p8), 1, %s771_s16  }
  0x39   : > { %s543_s21 = sshll.u32 (!%p875_p8), %s936_s12, 3  ;;  %s228_s22 = scalar_lea.sflag (!%p875_p8), [#allocation3], %s936_s12 }
  0x3a   : > { %s231_s1 = scalar_lea.vmem (!%p875_p8), [#allocation2], %s543_s21  ;;  %p1024_p12 = scmp.ne.s32.totalorder (!%p875_p8), %s1016_s25, 0 }
  0x3d   : > { %754 = dma.done.wait (%p1024_p12), %s228_s22, 128  }
  0x3e   : > { %756 = vsyncadd (%p1024_p12), %s228_s22, 4294967168 }
  0x3f   : > { %758 = dma.done.wait (%p855_p1), [#allocation6], 512  }
  0x40   : > { %760 = vsyncadd (%p855_p1), [#allocation6], 4294966784  ;;  %v793_v0 = vmov 0.0   ;;  %vm794_vm0 = vmmov 0   ;;  %v278_v1 = vld [vmem:[#allocation5 + $0x18] sm:$0xff]  ;;  %v277_v2 = vld [vmem:[#allocation5 + $0x10] sm:$0xff] }
  0x41   : > { %559 = vmatprep.subr.mxu0 %v793_v0  ;;  %567 = vmatprep.mubr.msk.f32.mxu0 %vm794_vm0, %v793_v0  ;;  %v276_v3 = vld [vmem:[#allocation5 + $0x8] sm:$0xff]  ;;  %v275_v4 = vld [vmem:[#allocation5] sm:$0xff]  ;;  %v274_v5 = vld [vmem:[%s231_s1] sm:$0xff]  ;;  %vm279_vm1 = vcmask 261120   ;;  %p270_p1 = scmp.lt.s32.totalorder %s779_s18, 1  ;;  %vm370_vm2 = vcmask 7168  }
  0x42   : > { %560 = vmatpush3.msra.mxu0 %v278_v1  ;;  %v549_v12 = vld [vmem:[%s1009_s2] ss:$0 sm:$0xff]  ;;  %s551_s9 = sshll.u32 %s779_s18, 7  ;;  %s266_s24 = scalar_lea.vmem [#allocation7], %s543_s21 }
  0x43   : > { %561 = vmatprep.subr.mxu0 %v793_v0  ;;  %s271_s23 = scalar_select %p270_p1, %s779_s18, 1 }
  0x44   : > { %562 = vmatpush3.msra.mxu0 %v277_v2  ;;  %s407_s10 = sshll.u32 %s266_s24, 4  ;;  %s405_s29 = scalar_lea.hbm %s1011_s4, %s551_s9  ;;  %s408_s10 = int_to_ptr.vmem [resolvable:$true] %s407_s10 }
  0x45   : > { %563 = vmatprep.subr.mxu0 %v793_v0  ;;  %s546_s25 = sshll.u32 %s271_s23, 3  ;;  %s390_s22 = scalar_lea.sflag [#allocation4], %s936_s12 }
  0x46   : > { %564 = vmatpush3.msra.mxu0 %v276_v3  ;;  %s955_s6 = scalar_lea.vmem %s1010_s3, %s546_s25  ;;  %s703_s1 = scalar_lea.vmem %s408_s10, 128 }
  0x47   : > { %565 = vmatprep.subr.mxu0 %v793_v0  ;;  %371 = vst.msk [vmem:[%s955_s6] sm:$0xff] %vm370_vm2, %v793_v0  ;;  %p704_p8 = scmp.ne.s32.totalorder %s408_s10, %s703_s1  ;;  %s795_s23 = smov [#allocation7]  }
  0x48   : > { %566 = vmatpush3.msra.mxu0 %v275_v4  ;;  %s707_s25 = sshll.u32 %s795_s23, 4  ;;  %s708_s25 = int_to_ptr.vmem [resolvable:$false] %s707_s25 }
  0x49   : > { %568 = vmatmul.mubr.msk.f32.vlgmr.msra.gmra.mxu0 %vm279_vm1, %v274_v5  ;;  %p705_p10 = pnand %p704_p8, %p908_p13  ;;  %s709_s27 = scalar_lea.vmem %s708_s25, 256 }
  0x4a   : > { %p710_p2 = scmp.lt.s32.totalorder %s408_s10, %s708_s25  ;;  %p711_p3 = scmp.lt.s32.totalorder %s709_s27, %s703_s1 }
  0x4b   : > { %p706_p0 = pneg %p705_p10 }
  0x4c   : > { %p712_p5 = por %p711_p3, %p710_p2 }
  0x4e   : > { %p713_p7 = pnand %p712_p5, %p706_p0 }
 0x109   : > { %v349_v6 = vpop.f32.mrf.mxu0 }
 0x10a   : > { %v353_v7 = vmul.f32 2.0, %v349_v6 }
 0x10b   : > { %v569_v8 = vpop.f32.mrf.mxu0 }
 0x10c   : > { %v548_v9 = vadd.f32 -2.0, %v353_v7 }
 0x10e   : > { %v355_v10 = vmin.f32 %v548_v9, 0.0 }
 0x110   : > { %v356_v11 = vmul.f32 1.442695, %v355_v10 }
 0x112   : > { %647 = vpow2.f32 %v356_v11 }
 0x11f   : > { %v648_v13 = vpop.eup %647 }
 0x120   : > { %v365_v14 = vmul.f32 %v648_v13, %v549_v12 }
 0x122   : > { %373 = vadd.xlane.f32.xlu0 %v365_v14  ;;  %v378_v15 = vrot.slane %v365_v14, 4 }
 0x124   : > { %v379_v16 = vadd.f32 %v378_v15, %v365_v14 }
 0x126   : > { %v380_v17 = vrot.slane %v379_v16, 2 }
 0x128   : > { %v381_v18 = vadd.f32 %v380_v17, %v379_v16 }
 0x12a   : > { %v382_v19 = vrot.slane %v381_v18, 1 }
 0x12c   : > { %v383_v20 = vadd.f32 %v382_v19, %v381_v18 }
 0x12e   : > { %384 = vst [vmem:[%s266_s24] sm:$0xff] %v383_v20 }
 0x12f   : > { %716 = shalt.err (!%p713_p7)
}
 0x130   : > { %s717_s18 = scalar_lea.hbm %s405_s29, 128  ;;  %s721_s30 = scalar_lea.hbm %s1011_s4, 256 }
 0x131   : > { %p718_p6 = scmp.ne.s32.totalorder %s405_s29, %s717_s18  ;;  %p722_p11 = scmp.lt.s32.totalorder %s405_s29, %s1011_s4 }
 0x132   : > { %p723_p12 = scmp.lt.s32.totalorder %s721_s30, %s717_s18 }
 0x133   : > { %p719_p4 = pnand %p718_p6, %p908_p13 }
 0x134   : > { %p724_p1 = por %p723_p12, %p722_p11 }
 0x135   : > { %p720_p9 = pneg %p719_p4 }
 0x137   : > { %p725_p8 = pnand %p724_p1, %p720_p9 }
 0x139   : > { %728 = shalt.err (!%p725_p8)
}
 0x13a   : > { %576 = dma.vmem_to_hbm [thread:$0]  (%p908_p13), %s408_s10, 128, %s405_s29, %s390_s22   ;;  %v372_v21 = vld [vmem:[%s955_s6] sm:$0xff] }
 0x1ab   : > { %v374_v22 = vpop.xlane.xlu0 %373 }
 0x1ac   : > { %v375_v23 = vadd.f32 %v374_v22, %v372_v21 }
 0x1ae   : > { %377 = vst.msk [vmem:[%s955_s6] sm:$0xff] %vm370_vm2, %v375_v23 }
 0x1af PF: > { %s426_s9 = sand.u32 1, %s767_s15   ;;  %p1025_p10 = scmp.ne.s32.totalorder %s1017_s26, 0 }
 0x1b0   : > { %p1026_p0 = scmp.ge.s32.totalorder %s787_s20, 2  ;;  %s427_s24 = scalar_lea.sflag [#allocation4], %s426_s9 }
 0x1b2   : > { %p587_p2 = pnand %p1026_p0, %p1025_p10 }
 0x1b4   : > { %p588_p3 = pneg %p587_p2 }
 0x1b6   : > { %762 = dma.done.wait (%p588_p3), %s427_s24, 128  }
 0x1b7   : > { %764 = vsyncadd (%p588_p3), %s427_s24, 4294967168  ;;  %s22_s20 = sadd.s32 1, %s787_s20   ;;  %s1027_s15 = smov %s771_s16 }
 0x1b8   : > { %p19_p13 = scmp.ge.s32.totalorder %s22_s20, 4   ;;  %s1028_s16 = smov %s775_s17 }
 0x1b9   : > { %s1029_s17 = smov %s917_s28  ;;  %s1030_s18 = smov %s783_s19 }
 0x1ba   : > { %s1031_s19 = smov %s1033_s5  ;;  %21 = sbr.rel (!%p19_p13) target bundleno = 9 (0x9), region = 101 }
 0x1bf   :  { %432 = vsyncpa [#allocation3], 1 }
 0x1c0   :  { %434 = vsyncpa [#allocation3 + $0x1], 1 }
 0x1c1   :  { %435 = vsyncpa [#allocation6], 1 }
 0x1c2   :  { %436 = vsyncpa [#allocation4], 1 }
 0x1c3   :  { %438 = vsyncpa [#allocation4 + $0x1], 1 }

</bundles_post_ra>
